<compile_context>
chip_gen: v6e
topology: v6e:2x2x1
jax: 0.10.0
libtpu: 0.0.40
codegen_flags: <defaults>
</compile_context>

<pallas_src>
import jax
import jax.numpy as jnp
from jax.experimental import pallas as pl
from jax.experimental.pallas import tpu as pltpu

EPS = 1e-5


def _round_up(a, b):
    return ((a + b - 1) // b) * b


def _tpu_tile_config():
    """Per-generation tile sizes, weight-buffer depth and VMEM limit."""
    try:
        kind = jax.devices()[0].device_kind.lower()
    except Exception:  # defensive: fall through to VMEM-based sizing
        kind = ""
    try:
        vmem_cap = int(getattr(pltpu.get_tpu_info(), "vmem_capacity_bytes",
                               64 * 1024 * 1024))
    except Exception:
        vmem_cap = 64 * 1024 * 1024
    # Leave headroom for Mosaic-internal scratch / semaphores.
    vmem_limit = max(32 * 1024 * 1024, vmem_cap - 16 * 1024 * 1024)

    if "v5e" in kind or "v5 lite" in kind or "v5lite" in kind:
        # ~240 FLOPs/byte crossover: tile_t=256 is enough; spend VMEM on a deeper
        # weight pipeline instead (1 vst slot + slower HBM => exposed DMA jitter).
        return dict(tile_t=256, tile_vocab=512, w_buffers=3, vmem_limit=vmem_limit)
    if "v6" in kind:
        # Needs ~650-700 FLOPs per streamed weight byte to leave the HBM roofline.
        return dict(tile_t=768, tile_vocab=512, w_buffers=None, vmem_limit=vmem_limit)
    if "v7" in kind:
        # Only 64 MiB VMEM: keep the token tile large but shrink the vocab tile.
        # TODO(synk): for H >= ~16K add a K(H) grid axis + fp32 accumulator so no
        # operand block carries full H.
        return dict(tile_t=512, tile_vocab=256, w_buffers=None, vmem_limit=vmem_limit)
    # Unknown chip: size by VMEM capacity.
    if vmem_cap >= 100 * 1024 * 1024:
        return dict(tile_t=512, tile_vocab=512, w_buffers=None, vmem_limit=vmem_limit)
    return dict(tile_t=384, tile_vocab=256, w_buffers=None, vmem_limit=vmem_limit)


def lm_head_kernel(x_ref, gamma_ref, beta_ref, w_ref, bias_ref, o_ref, xn_ref):
    # x_ref:     (tile_t, H) bf16      token tile (resident across the vocab sweep)
    # gamma_ref: (1, H)                LayerNorm scale
    # beta_ref:  (1, H)                LayerNorm shift
    # w_ref:     (H, tile_vocab) bf16  vocab tile of the pre-transposed weight
    # bias_ref:  (1, tile_vocab)       bias tile
    # o_ref:     (tile_t, tile_vocab)  logits tile
    # xn_ref:    (tile_t, H) bf16      cached LayerNorm output (VMEM scratch)

    # LayerNorm once per token tile: the vocab axis (grid dim 2) is innermost, so this
    # fires exactly once before the vocab sweep for this (split, token-tile) pair.
    @pl.when(pl.program_id(2) == 0)
    def _():
        x = x_ref[...].astype(jnp.float32)
        mean = jnp.mean(x, axis=-1, keepdims=True)
        centered = x - mean
        var = jnp.mean(centered * centered, axis=-1, keepdims=True)
        xn = centered * jax.lax.rsqrt(var + EPS)
        xn = xn * gamma_ref[...].astype(jnp.float32) + beta_ref[...].astype(jnp.float32)
        xn_ref[...] = xn.astype(xn_ref.dtype)

    # Steady state: bf16 x bf16 MXU matmul with fp32 accumulation + bias add.
    logits = jnp.dot(xn_ref[...], w_ref[...], preferred_element_type=jnp.float32)
    logits = logits + bias_ref[...].astype(jnp.float32)
    o_ref[...] = logits.astype(o_ref.dtype)


def lm_head_forward(x, gamma, beta, w_t, bias, *, tile_t=None, tile_vocab=None,
                    out_dtype=None):
    """x: (B, S, H) -> logits (B, S, V).

    w_t: (H, V) = torch lm_head.weight.T ; bias: (V,).
    out_dtype defaults to x.dtype (torch semantics); pass jnp.bfloat16 to halve the
    logits writeback bytes if the downstream consumer accepts bf16.
    """
    B, S, H = x.shape
    V = w_t.shape[1]
    T = B * S
    out_dtype = x.dtype if out_dtype is None else out_dtype

    cfg = _tpu_tile_config()
    tile_t = cfg["tile_t"] if tile_t is None else tile_t
    tile_vocab = cfg["tile_vocab"] if tile_vocab is None else tile_vocab

    # --- token tiling (multiple of 8 sublanes) --------------------------------------
    tile_t = max(8, min(tile_t, _round_up(T, 8)))
    tile_t = _round_up(tile_t, 8)
    T_pad = _round_up(T, tile_t)
    n_t = T_pad // tile_t

    # --- vocab tiling (lane-dense multiple of 128); V is padded, never asserted -----
    tile_vocab = min(tile_vocab, _round_up(V, 128))
    tile_vocab = _round_up(tile_vocab, 128)

    # Decode-shaped inputs (single token tile): split the vocab sweep into a leading
    # parallel axis of 2 so both v7x TensorCores get work.  On single-TC chips this
    # just recomputes the tiny LN once more, which is negligible.
    vsplit = 2 if (n_t == 1 and _round_up(V, tile_vocab) // tile_vocab >= 2) else 1
    V_pad = _round_up(V, vsplit * tile_vocab)
    n_v = V_pad // tile_vocab
    n_v_inner = n_v // vsplit

    # --- operands --------------------------------------------------------------------
    # bf16 activations halve the x DMA bytes / VMEM footprint; LN math stays fp32.
    x2 = x.reshape(T, H).astype(jnp.bfloat16)
    if T_pad != T:
        # Padded token rows produce xn == beta (not zero) and junk logits; they are
        # sliced off below and var+eps keeps them finite, so this is benign.
        x2 = jnp.pad(x2, ((0, T_pad - T), (0, 0)))
    gamma2 = gamma.reshape(1, H)
    beta2 = beta.reshape(1, H)
    w2 = w_t.astype(jnp.bfloat16)            # half the weight-stream bytes; MXU-native
    bias2 = bias.reshape(1, V)
    if V_pad != V:
        w2 = jnp.pad(w2, ((0, 0), (0, V_pad - V)))
        bias2 = jnp.pad(bias2, ((0, 0), (0, V_pad - V)))

    grid = (vsplit, n_t, n_v_inner)

    def _run(use_buffer_hints):
        if use_buffer_hints:
            # x only changes once per vocab sweep -> single buffer (saves tile_t*H B).
            x_spec = pl.BlockSpec((tile_t, H), lambda c, i, j: (i, 0),
                                  pipeline_mode=pl.Buffered(1))
            if cfg["w_buffers"] is not None:
                w_spec = pl.BlockSpec((H, tile_vocab),
                                      lambda c, i, j: (0, c * n_v_inner + j),
                                      pipeline_mode=pl.Buffered(cfg["w_buffers"]))
            else:
                w_spec = pl.BlockSpec((H, tile_vocab),
                                      lambda c, i, j: (0, c * n_v_inner + j))
        else:
            x_spec = pl.BlockSpec((tile_t, H), lambda c, i, j: (i, 0))
            w_spec = pl.BlockSpec((H, tile_vocab),
                                  lambda c, i, j: (0, c * n_v_inner + j))

        return pl.pallas_call(
            lm_head_kernel,
            out_shape=jax.ShapeDtypeStruct((T_pad, V_pad), out_dtype),
            grid_spec=pltpu.PrefetchScalarGridSpec(
                num_scalar_prefetch=0,
                grid=grid,
                in_specs=[
                    x_spec,                                                   # x tile
                    pl.BlockSpec((1, H), lambda c, i, j: (0, 0)),             # gamma
                    pl.BlockSpec((1, H), lambda c, i, j: (0, 0)),             # beta
                    w_spec,                                                   # bf16 W tile
                    pl.BlockSpec((1, tile_vocab),
                                 lambda c, i, j: (0, c * n_v_inner + j)),     # bias tile
                ],
                out_specs=pl.BlockSpec((tile_t, tile_vocab),
                                       lambda c, i, j: (i, c * n_v_inner + j)),
                scratch_shapes=[pltpu.VMEM((tile_t, H), jnp.bfloat16)],       # cached LN(x)
            ),
            compiler_params=pltpu.CompilerParams(
                # vocab-split and token-tile axes are independent; the inner vocab
                # axis carries the LN-cache dependency.
                dimension_semantics=("parallel", "parallel", "arbitrary"),
                vmem_limit_bytes=int(cfg["vmem_limit"]),
            ),
        )(x2, gamma2, beta2, w2, bias2)

    try:
        out = _run(True)
    except Exception:
        # Buffer-depth hints (pipeline_mode=pl.Buffered) are best-effort; fall back to
        # default double buffering if this JAX/Mosaic build rejects them.
        out = _run(False)

    if T_pad != T or V_pad != V:
        out = out[:T, :V]
    return out.reshape(B, S, V)


def lm_head_reference(x, gamma, beta, w_t, bias):
    # Full fp32 reference (torch semantics).  The kernel runs bf16 inputs / fp32
    # accumulation, so compare with a loose tolerance.
    xf = x.astype(jnp.float32)
    mean = jnp.mean(xf, axis=-1, keepdims=True)
    var = jnp.mean((xf - mean) ** 2, axis=-1, keepdims=True)
    xn = (xf - mean) * jax.lax.rsqrt(var + EPS)
    xn = xn * gamma.astype(jnp.float32) + beta.astype(jnp.float32)
    return (xn @ w_t.astype(jnp.float32) + bias.astype(jnp.float32)).astype(x.dtype)


if __name__ == "__main__":
    key = jax.random.PRNGKey(0)
    kx, kg, kb, kw, kbias, kx2 = jax.random.split(key, 6)

    # Small shapes implied by the forward: [batch, seq, hidden] -> [batch, seq, vocab].
    # S=9 makes T non-divisible (token-padding path); V=1000 is not a multiple of 128
    # (vocab-padding path, as real vocab sizes never divide evenly).
    B, S, H, V = 2, 9, 128, 1000

    x = jax.random.normal(kx, (B, S, H), dtype=jnp.float32)
    # final_layer_norm params (torch.nn.LayerNorm(H)), perturbed so the affine matters.
    gamma = 1.0 + 0.1 * jax.random.normal(kg, (H,), dtype=jnp.float32)
    beta = 0.1 * jax.random.normal(kb, (H,), dtype=jnp.float32)
    # lm_head (torch.nn.Linear(H, V)): weight (V, H), bias (V,).  Stored transposed.
    w_t = 0.02 * jax.random.normal(kw, (H, V), dtype=jnp.float32)
    bias = 0.01 * jax.random.normal(kbias, (V,), dtype=jnp.float32)

    # Prefill-shaped: multiple token tiles and vocab tiles (exercises the LN-cache
    # @pl.when path and both padding paths).  Small tiles here only for test coverage;
    # production defaults come from _tpu_tile_config().
    out = lm_head_forward(x, gamma, beta, w_t, bias, tile_t=8, tile_vocab=256)
    out = jax.block_until_ready(out)
    ref = lm_head_reference(x, gamma, beta, w_t, bias)
    assert out.shape == (B, S, V)
    assert jnp.allclose(out, ref, atol=2.5e-2, rtol=2.5e-2), "prefill mismatch vs reference"

    # Decode-shaped: a single token tile -> exercises the vocab-split (2-TC) path.
    xd = jax.random.normal(kx2, (1, 1, H), dtype=jnp.float32)
    outd = lm_head_forward(xd, gamma, beta, w_t, bias, tile_t=8, tile_vocab=256)
    outd = jax.block_until_ready(outd)
    refd = lm_head_reference(xd, gamma, beta, w_t, bias)
    assert outd.shape == (1, 1, V)
    assert jnp.allclose(outd, refd, atol=2.5e-2, rtol=2.5e-2), "decode mismatch vs reference"

    print("KERNEL_OK")
</pallas_src>

<mosaic_0001>
module attributes {stable_mosaic.version = 11 : i64} {
  func.func @lm_head_kernel(%arg0: i32, %arg1: i32, %arg2: i32, %arg3: memref<8x128xbf16, #tpu.memory_space<vmem>>, %arg4: memref<1x128xf32, #tpu.memory_space<vmem>>, %arg5: memref<1x128xf32, #tpu.memory_space<vmem>>, %arg6: memref<128x256xbf16, #tpu.memory_space<vmem>>, %arg7: memref<1x256xf32, #tpu.memory_space<vmem>>, %arg8: memref<8x256xf32, #tpu.memory_space<vmem>>, %arg9: memref<8x128xbf16, #tpu.memory_space<vmem>>) attributes {dimension_semantics = [#tpu.dimension_semantics<parallel>, #tpu.dimension_semantics<parallel>, #tpu.dimension_semantics<arbitrary>], iteration_bounds = array<i64: 1, 3, 4>, scalar_prefetch = 0 : i64, scratch_operands = 1 : i64, tpu.core_type = #tpu.core_type<tc>, window_params = [{pipeline_mode = #tpu.pipeline_mode<synchronous>, transform_indices = @transform_0, window_bounds = array<i64: 8, 128>}, {pipeline_mode = #tpu.pipeline_mode<synchronous>, transform_indices = @transform_1, window_bounds = array<i64: 1, 128>}, {pipeline_mode = #tpu.pipeline_mode<synchronous>, transform_indices = @transform_2, window_bounds = array<i64: 1, 128>}, {transform_indices = @transform_3, window_bounds = array<i64: 128, 256>}, {transform_indices = @transform_4, window_bounds = array<i64: 1, 256>}, {transform_indices = @transform_5, window_bounds = array<i64: 8, 256>}]} {
    %c0_i32 = arith.constant 0 : i32
    %0 = arith.cmpi eq, %arg2, %c0_i32 : i32
    %1 = arith.extui %0 : i1 to i32
    %c0_i32_0 = arith.constant 0 : i32
    %2 = arith.cmpi ne, %1, %c0_i32_0 : i32
    scf.if %2 {
      %c0_8 = arith.constant 0 : index
      %c0_9 = arith.constant 0 : index
      %10 = vector.load %arg3[%c0_8, %c0_9] : memref<8x128xbf16, #tpu.memory_space<vmem>>, vector<8x128xbf16>
      %11 = arith.extf %10 : vector<8x128xbf16> to vector<8x128xf32>
      %cst_10 = arith.constant dense<0.000000e+00> : vector<8xf32>
      %12 = vector.multi_reduction <add>, %11, %cst_10 [1] : vector<8x128xf32> to vector<8xf32>
      %13 = vector.shape_cast %12 : vector<8xf32> to vector<8x1xf32>
      %cst_11 = arith.constant 1.280000e+02 : f32
      %14 = vector.broadcast %cst_11 : f32 to vector<8x1xf32>
      %15 = arith.divf %13, %14 : vector<8x1xf32>
      %16 = vector.broadcast %15 : vector<8x1xf32> to vector<8x128xf32>
      %17 = arith.subf %11, %16 : vector<8x128xf32>
      %18 = arith.mulf %17, %17 : vector<8x128xf32>
      %cst_12 = arith.constant dense<0.000000e+00> : vector<8xf32>
      %19 = vector.multi_reduction <add>, %18, %cst_12 [1] : vector<8x128xf32> to vector<8xf32>
      %20 = vector.shape_cast %19 : vector<8xf32> to vector<8x1xf32>
      %cst_13 = arith.constant 1.280000e+02 : f32
      %21 = vector.broadcast %cst_13 : f32 to vector<8x1xf32>
      %22 = arith.divf %20, %21 : vector<8x1xf32>
      %cst_14 = arith.constant 9.99999974E-6 : f32
      %23 = vector.broadcast %cst_14 : f32 to vector<8x1xf32>
      %24 = arith.addf %22, %23 : vector<8x1xf32>
      %25 = math.rsqrt %24 : vector<8x1xf32>
      %26 = vector.broadcast %25 : vector<8x1xf32> to vector<8x128xf32>
      %27 = arith.mulf %17, %26 : vector<8x128xf32>
      %c0_15 = arith.constant 0 : index
      %c0_16 = arith.constant 0 : index
      %28 = vector.load %arg4[%c0_15, %c0_16] : memref<1x128xf32, #tpu.memory_space<vmem>>, vector<1x128xf32>
      %29 = vector.broadcast %28 : vector<1x128xf32> to vector<8x128xf32>
      %30 = arith.mulf %27, %29 : vector<8x128xf32>
      %c0_17 = arith.constant 0 : index
      %c0_18 = arith.constant 0 : index
      %31 = vector.load %arg5[%c0_17, %c0_18] : memref<1x128xf32, #tpu.memory_space<vmem>>, vector<1x128xf32>
      %32 = vector.broadcast %31 : vector<1x128xf32> to vector<8x128xf32>
      %33 = arith.addf %30, %32 : vector<8x128xf32>
      %34 = arith.truncf %33 : vector<8x128xf32> to vector<8x128xbf16>
      %c0_19 = arith.constant 0 : index
      %c0_20 = arith.constant 0 : index
      %35 = vector.load %arg9[%c0_19, %c0_20] : memref<8x128xbf16, #tpu.memory_space<vmem>>, vector<8x128xbf16>
      tpu.vector_store %arg9[%c0_19, %c0_20], %34 {strides = array<i32>} : memref<8x128xbf16, #tpu.memory_space<vmem>>, vector<8x128xbf16>,
    } else {
    }
    %c0 = arith.constant 0 : index
    %c0_1 = arith.constant 0 : index
    %3 = vector.load %arg9[%c0, %c0_1] : memref<8x128xbf16, #tpu.memory_space<vmem>>, vector<8x128xbf16>
    %c0_2 = arith.constant 0 : index
    %c0_3 = arith.constant 0 : index
    %4 = vector.load %arg6[%c0_2, %c0_3] : memref<128x256xbf16, #tpu.memory_space<vmem>>, vector<128x256xbf16>
    %cst = arith.constant dense<0.000000e+00> : vector<8x256xf32>
    %5 = tpu.matmul %3, %4, %cst {dimension_numbers = #tpu.dot_dimension_numbers<[1], [0], [0], [1], [0, 0, 1, 1], [], []>} : vector<8x128xbf16>, vector<128x256xbf16>, vector<8x256xf32> -> vector<8x256xf32>
    %c0_4 = arith.constant 0 : index
    %c0_5 = arith.constant 0 : index
    %6 = vector.load %arg7[%c0_4, %c0_5] : memref<1x256xf32, #tpu.memory_space<vmem>>, vector<1x256xf32>
    %7 = vector.broadcast %6 : vector<1x256xf32> to vector<8x256xf32>
    %8 = arith.addf %5, %7 : vector<8x256xf32>
    %c0_6 = arith.constant 0 : index
    %c0_7 = arith.constant 0 : index
    %9 = vector.load %arg8[%c0_6, %c0_7] : memref<8x256xf32, #tpu.memory_space<vmem>>, vector<8x256xf32>
    tpu.vector_store %arg8[%c0_6, %c0_7], %8 {strides = array<i32>} : memref<8x256xf32, #tpu.memory_space<vmem>>, vector<8x256xf32>,
    return
  }
  func.func @transform_0(%arg0: i32, %arg1: i32, %arg2: i32) -> (i32, i32) {
    %c0_i32 = arith.constant 0 : i32
    %c0_i32_0 = arith.constant 0 : i32
    return %arg1, %c0_i32 : i32, i32
  }
  func.func @transform_1(%arg0: i32, %arg1: i32, %arg2: i32) -> (i32, i32) {
    %c0_i32 = arith.constant 0 : i32
    %c0_i32_0 = arith.constant 0 : i32
    %c0_i32_1 = arith.constant 0 : i32
    return %c0_i32, %c0_i32_0 : i32, i32
  }
  func.func @transform_2(%arg0: i32, %arg1: i32, %arg2: i32) -> (i32, i32) {
    %c0_i32 = arith.constant 0 : i32
    %c0_i32_0 = arith.constant 0 : i32
    %c0_i32_1 = arith.constant 0 : i32
    return %c0_i32, %c0_i32_0 : i32, i32
  }
  func.func @transform_3(%arg0: i32, %arg1: i32, %arg2: i32) -> (i32, i32) {
    %c4_i32 = arith.constant 4 : i32
    %0 = arith.muli %arg0, %c4_i32 : i32
    %1 = arith.addi %0, %arg2 : i32
    %c0_i32 = arith.constant 0 : i32
    %c0_i32_0 = arith.constant 0 : i32
    return %c0_i32, %1 : i32, i32
  }
  func.func @transform_4(%arg0: i32, %arg1: i32, %arg2: i32) -> (i32, i32) {
    %c4_i32 = arith.constant 4 : i32
    %0 = arith.muli %arg0, %c4_i32 : i32
    %1 = arith.addi %0, %arg2 : i32
    %c0_i32 = arith.constant 0 : i32
    %c0_i32_0 = arith.constant 0 : i32
    return %c0_i32, %1 : i32, i32
  }
  func.func @transform_5(%arg0: i32, %arg1: i32, %arg2: i32) -> (i32, i32) {
    %c4_i32 = arith.constant 4 : i32
    %0 = arith.muli %arg0, %c4_i32 : i32
    %1 = arith.addi %0, %arg2 : i32
    %c0_i32 = arith.constant 0 : i32
    return %arg1, %1 : i32, i32
  }
}

module attributes {stable_mosaic.version = 11 : i64} {
  func.func @lm_head_kernel(%arg0: i32, %arg1: i32, %arg2: i32, %arg3: memref<8x128xbf16, #tpu.memory_space<vmem>>, %arg4: memref<1x128xf32, #tpu.memory_space<vmem>>, %arg5: memref<1x128xf32, #tpu.memory_space<vmem>>, %arg6: memref<128x256xbf16, #tpu.memory_space<vmem>>, %arg7: memref<1x256xf32, #tpu.memory_space<vmem>>, %arg8: memref<8x256xf32, #tpu.memory_space<vmem>>, %arg9: memref<8x128xbf16, #tpu.memory_space<vmem>>) attributes {dimension_semantics = [#tpu.dimension_semantics<parallel>, #tpu.dimension_semantics<parallel>, #tpu.dimension_semantics<arbitrary>], iteration_bounds = array<i64: 1, 3, 4>, scalar_prefetch = 0 : i64, scratch_operands = 1 : i64, tpu.core_type = #tpu.core_type<tc>, window_params = [{transform_indices = @transform_0, window_bounds = array<i64: 8, 128>}, {pipeline_mode = #tpu.pipeline_mode<synchronous>, transform_indices = @transform_1, window_bounds = array<i64: 1, 128>}, {pipeline_mode = #tpu.pipeline_mode<synchronous>, transform_indices = @transform_2, window_bounds = array<i64: 1, 128>}, {transform_indices = @transform_3, window_bounds = array<i64: 128, 256>}, {transform_indices = @transform_4, window_bounds = array<i64: 1, 256>}, {transform_indices = @transform_5, window_bounds = array<i64: 8, 256>}]} {
    %c0_i32 = arith.constant 0 : i32
    %0 = arith.cmpi eq, %arg2, %c0_i32 : i32
    %1 = arith.extui %0 : i1 to i32
    %c0_i32_0 = arith.constant 0 : i32
    %2 = arith.cmpi ne, %1, %c0_i32_0 : i32
    scf.if %2 {
      %c0_8 = arith.constant 0 : index
      %c0_9 = arith.constant 0 : index
      %10 = vector.load %arg3[%c0_8, %c0_9] : memref<8x128xbf16, #tpu.memory_space<vmem>>, vector<8x128xbf16>
      %11 = arith.extf %10 : vector<8x128xbf16> to vector<8x128xf32>
      %cst_10 = arith.constant dense<0.000000e+00> : vector<8xf32>
      %12 = vector.multi_reduction <add>, %11, %cst_10 [1] : vector<8x128xf32> to vector<8xf32>
      %13 = vector.shape_cast %12 : vector<8xf32> to vector<8x1xf32>
      %cst_11 = arith.constant 1.280000e+02 : f32
      %14 = vector.broadcast %cst_11 : f32 to vector<8x1xf32>
      %15 = arith.divf %13, %14 : vector<8x1xf32>
      %16 = vector.broadcast %15 : vector<8x1xf32> to vector<8x128xf32>
      %17 = arith.subf %11, %16 : vector<8x128xf32>
      %18 = arith.mulf %17, %17 : vector<8x128xf32>
      %cst_12 = arith.constant dense<0.000000e+00> : vector<8xf32>
      %19 = vector.multi_reduction <add>, %18, %cst_12 [1] : vector<8x128xf32> to vector<8xf32>
      %20 = vector.shape_cast %19 : vector<8xf32> to vector<8x1xf32>
      %cst_13 = arith.constant 1.280000e+02 : f32
      %21 = vector.broadcast %cst_13 : f32 to vector<8x1xf32>
      %22 = arith.divf %20, %21 : vector<8x1xf32>
      %cst_14 = arith.constant 9.99999974E-6 : f32
      %23 = vector.broadcast %cst_14 : f32 to vector<8x1xf32>
      %24 = arith.addf %22, %23 : vector<8x1xf32>
      %25 = math.rsqrt %24 : vector<8x1xf32>
      %26 = vector.broadcast %25 : vector<8x1xf32> to vector<8x128xf32>
      %27 = arith.mulf %17, %26 : vector<8x128xf32>
      %c0_15 = arith.constant 0 : index
      %c0_16 = arith.constant 0 : index
      %28 = vector.load %arg4[%c0_15, %c0_16] : memref<1x128xf32, #tpu.memory_space<vmem>>, vector<1x128xf32>
      %29 = vector.broadcast %28 : vector<1x128xf32> to vector<8x128xf32>
      %30 = arith.mulf %27, %29 : vector<8x128xf32>
      %c0_17 = arith.constant 0 : index
      %c0_18 = arith.constant 0 : index
      %31 = vector.load %arg5[%c0_17, %c0_18] : memref<1x128xf32, #tpu.memory_space<vmem>>, vector<1x128xf32>
      %32 = vector.broadcast %31 : vector<1x128xf32> to vector<8x128xf32>
      %33 = arith.addf %30, %32 : vector<8x128xf32>
      %34 = arith.truncf %33 : vector<8x128xf32> to vector<8x128xbf16>
      %c0_19 = arith.constant 0 : index
      %c0_20 = arith.constant 0 : index
      %35 = vector.load %arg9[%c0_19, %c0_20] : memref<8x128xbf16, #tpu.memory_space<vmem>>, vector<8x128xbf16>
      tpu.vector_store %arg9[%c0_19, %c0_20], %34 {strides = array<i32>} : memref<8x128xbf16, #tpu.memory_space<vmem>>, vector<8x128xbf16>,
    } else {
    }
    %c0 = arith.constant 0 : index
    %c0_1 = arith.constant 0 : index
    %3 = vector.load %arg9[%c0, %c0_1] : memref<8x128xbf16, #tpu.memory_space<vmem>>, vector<8x128xbf16>
    %c0_2 = arith.constant 0 : index
    %c0_3 = arith.constant 0 : index
    %4 = vector.load %arg6[%c0_2, %c0_3] : memref<128x256xbf16, #tpu.memory_space<vmem>>, vector<128x256xbf16>
    %cst = arith.constant dense<0.000000e+00> : vector<8x256xf32>
    %5 = tpu.matmul %3, %4, %cst {dimension_numbers = #tpu.dot_dimension_numbers<[1], [0], [0], [1], [0, 0, 1, 1], [], []>} : vector<8x128xbf16>, vector<128x256xbf16>, vector<8x256xf32> -> vector<8x256xf32>
    %c0_4 = arith.constant 0 : index
    %c0_5 = arith.constant 0 : index
    %6 = vector.load %arg7[%c0_4, %c0_5] : memref<1x256xf32, #tpu.memory_space<vmem>>, vector<1x256xf32>
    %7 = vector.broadcast %6 : vector<1x256xf32> to vector<8x256xf32>
    %8 = arith.addf %5, %7 : vector<8x256xf32>
    %c0_6 = arith.constant 0 : index
    %c0_7 = arith.constant 0 : index
    %9 = vector.load %arg8[%c0_6, %c0_7] : memref<8x256xf32, #tpu.memory_space<vmem>>, vector<8x256xf32>
    tpu.vector_store %arg8[%c0_6, %c0_7], %8 {strides = array<i32>} : memref<8x256xf32, #tpu.memory_space<vmem>>, vector<8x256xf32>,
    return
  }
  func.func @transform_0(%arg0: i32, %arg1: i32, %arg2: i32) -> (i32, i32) {
    %c0_i32 = arith.constant 0 : i32
    %c0_i32_0 = arith.constant 0 : i32
    return %arg1, %c0_i32 : i32, i32
  }
  func.func @transform_1(%arg0: i32, %arg1: i32, %arg2: i32) -> (i32, i32) {
    %c0_i32 = arith.constant 0 : i32
    %c0_i32_0 = arith.constant 0 : i32
    %c0_i32_1 = arith.constant 0 : i32
    return %c0_i32, %c0_i32_0 : i32, i32
  }
  func.func @transform_2(%arg0: i32, %arg1: i32, %arg2: i32) -> (i32, i32) {
    %c0_i32 = arith.constant 0 : i32
    %c0_i32_0 = arith.constant 0 : i32
    %c0_i32_1 = arith.constant 0 : i32
    return %c0_i32, %c0_i32_0 : i32, i32
  }
  func.func @transform_3(%arg0: i32, %arg1: i32, %arg2: i32) -> (i32, i32) {
    %c4_i32 = arith.constant 4 : i32
    %0 = arith.muli %arg0, %c4_i32 : i32
    %1 = arith.addi %0, %arg2 : i32
    %c0_i32 = arith.constant 0 : i32
    %c0_i32_0 = arith.constant 0 : i32
    return %c0_i32, %1 : i32, i32
  }
  func.func @transform_4(%arg0: i32, %arg1: i32, %arg2: i32) -> (i32, i32) {
    %c4_i32 = arith.constant 4 : i32
    %0 = arith.muli %arg0, %c4_i32 : i32
    %1 = arith.addi %0, %arg2 : i32
    %c0_i32 = arith.constant 0 : i32
    %c0_i32_0 = arith.constant 0 : i32
    return %c0_i32, %1 : i32, i32
  }
  func.func @transform_5(%arg0: i32, %arg1: i32, %arg2: i32) -> (i32, i32) {
    %c4_i32 = arith.constant 4 : i32
    %0 = arith.muli %arg0, %c4_i32 : i32
    %1 = arith.addi %0, %arg2 : i32
    %c0_i32 = arith.constant 0 : i32
    return %arg1, %1 : i32, i32
  }
}

</mosaic_0001>

<bundles_post_ra>
// kernel: tpu_custom_call.1
= control target key start
LH: loop header
LB: loop body
LE: loop exit
PB: predicated region body
PF: predicated region fallthrough
CT: control target
= control target key end

     0   :  { %s1510_s0 = inlined_call_operand.hbm [shape: bf16[24,128], index: 0, kind: input, shape index: {}]   ;;  %s1511_s1 = inlined_call_operand.vmem [shape: f32[1,128], index: 1, kind: input, shape index: {}]   ;;  %s1512_s2 = inlined_call_operand.vmem [shape: f32[1,128], index: 2, kind: input, shape index: {}]   ;;  %s1513_s3 = inlined_call_operand.hbm [shape: bf16[128,1024], index: 3, kind: input, shape index: {}]   ;;  %s1514_s4 = inlined_call_operand.hbm [shape: f32[1,1024], index: 4, kind: input, shape index: {}]   ;;  %s1515_s5 = inlined_call_operand.hbm [shape: f32[24,1024], index: 5, kind: output, shape index: {}]  }
   0x1   :  { %1533 = sst [smem:[#allocation25_spill]] %s1511_s1 }
   0x2   :  { %1534 = sst [smem:[#allocation26_spill]] %s1512_s2 }
   0x3   :  { %1535 = sst [smem:[#allocation27_spill]] %s1513_s3 }
   0x4   :  { %1536 = sst [smem:[#allocation28_spill]] %s1514_s4 }
   0x5   :  { %1537 = sst [smem:[#allocation29_spill]] %s1515_s5 }
   0x6   :  { %10 = vsyncpa [#allocation4], 0 }
   0x7   :  { %11 = vsyncpa [#allocation7], 0 }
   0x8   :  { %13 = vsyncpa [#allocation7 + $0x1], 0 }
   0x9   :  { %14 = vsyncpa [#allocation5], 0 }
   0xa   :  { %16 = vsyncpa [#allocation5 + $0x1], 0  ;;  %s1161_s18 = smov 0   ;;  %s1163_s19 = smov 0  }
   0xb   :  { %s1165_s20 = smov 0   ;;  %s1167_s21 = smov 0  }
   0xc   :  { %s1169_s22 = smov 0   ;;  %s1171_s23 = smov 0  }
   0xd   :  { %s1173_s24 = smov 0   ;;  %s1175_s25 = smov 0  }
   0xe   :  { %s1177_s26 = smov 0   ;;  %s1179_s27 = smov 0  }
   0xf   :  { %s1181_s28 = smov 0   ;;  %s1183_s29 = smov 0  }
  0x10   :  { %s1185_s30 = smov 0   ;;  %s1187_s6 = smov 0  }
  0x11 LB: > { %1538 = sst [smem:[#allocation13_spill]] %s1077_s20  ;;  %s34_s7 = sadd.s32 1, %s1113_s29  ;;  %s1121_s6 = sphi %s1187_s6, %s22_s6   ;;  %s1117_s30 = sphi %s1185_s30, %s1584_s30   ;;  %s1113_s29 = sphi %s1183_s29, %s1583_s29   ;;  %s1109_s28 = sphi %s1181_s28, %s1582_s28   ;;  %s1105_s27 = sphi %s1179_s27, %s1581_s27   ;;  %s1101_s26 = sphi %s1177_s26, %s1580_s26   ;;  %s1097_s25 = sphi %s1175_s25, %s1579_s25   ;;  %s1093_s24 = sphi %s1173_s24, %s1578_s24   ;;  %s1089_s23 = sphi %s1171_s23, %s1577_s23   ;;  %s1085_s22 = sphi %s1169_s22, %s1588_s22   ;;  %s1081_s21 = sphi %s1167_s21, %s1587_s21   ;;  %s1077_s20 = sphi %s1165_s20, %s1575_s20   ;;  %s1073_s19 = sphi %s1163_s19, %s1586_s19   ;;  %s1069_s18 = sphi %s1161_s18, %s1585_s18  }
  0x12   : > { %1539 = sst [smem:[#allocation14_spill]] %s1089_s23  ;;  %s37_s8 = sadd.s32 1, %s1117_s30 }
  0x13   : > { %1540 = sst [smem:[#allocation15_spill]] %s1097_s25  ;;  %p35_p0 = scmp.ge.s32.totalorder %s34_s7, 4 }
  0x14   : > { %1541 = sst [smem:[#allocation16_spill]] %s1101_s26  ;;  %s48_s9 = sadd.s32 1, %s1101_s26 }
  0x15   : > { %1542 = sst [smem:[#allocation17_spill]] %s1105_s27  ;;  %s120_s10 = sadd.s32 1, %s1089_s23 }
  0x16   : > { %1543 = sst [smem:[#allocation18_spill]] %s1113_s29  ;;  %p127_p1 = scmp.ne.s32.totalorder %s1089_s23, %s1085_s22 }
  0x17   : > { %1544 = sst [smem:[#allocation19_spill]] %s1117_s30  ;;  %s1590_s7 = smov (%p35_p0, %s34_s7), 0 }
  0x18   : > { %1545 = sst [smem:[#allocation20_spill]] %s1590_s7  ;;  %s1592_s8 = smov (!%p35_p0, %s37_s8), %s1117_s30 }
  0x19   : > { %s117_s11 = ssub.s32 %s1113_s29, %s1590_s7  ;;  %p128_p2 = scmp.eq.s32.totalorder %s1121_s6, 0 }
  0x1a   : > { %p39_p3 = scmp.ge.s32.totalorder %s1592_s8, 3  ;;  %p118_p4 = scmp.eq.s32.totalorder %s117_s11, 0 }
  0x1b   : > { %p1243_p5 = por %p128_p2, %p127_p1  ;;  %p744_p6 = scmp.lt.s32.totalorder %s1121_s6, 12 }
  0x1c   : > { %s1594_s8 = smov (%p39_p3, %s1592_s8), 0  ;;  %s238_s17 = sand.u32 1, %s1121_s6  }
  0x1d   : > { %1547 = sst [smem:[#allocation21_spill]] %s1594_s8  ;;  %s45_s14 = ssub.s32 %s1117_s30, %s1594_s8 }
  0x1e   : > { %s1250_s13 = scalar_select %p118_p4, %s1089_s23, %s120_s10  }
  0x1f   : > { %p46_p7 = scmp.eq.s32.totalorder %s45_s14, 0  ;;  %s179_s15 = sor.u32 %s117_s11, %s45_s14 }
  0x20   : > { %1548 = sst [smem:[#allocation22_spill]] %s1250_s13  ;;  %p1255_p8 = scmp.eq.s32.totalorder %s179_s15, 0 }
  0x21   : > { %s1261_s7 = scalar_select %p46_p7, %s1101_s26, %s48_s9  }
  0x22   : > { %s240_s5 = sand.u32 1, %s1089_s23   ;;  %s719_s1 = sshll.u32 %s1113_s29, 7 }
  0x23   : > { %1550 = sst [smem:[#allocation23_spill]] %s1261_s7  ;;  %s684_s2 = sshll.u32 %s240_s5, 7 }
  0x24   : > { %s1551_s3 = sld [smem:[#allocation27_spill]]  ;;  %s242_s13 = scalar_lea.vmem [#allocation6], %s684_s2 }
  0x25   : > { %s251_s8 = sshll.u32 %s242_s13, 4  ;;  %p1272_p9 = pnand %p744_p6, %p1243_p5  ;;  %s252_s8 = int_to_ptr.vmem [resolvable:$true] %s251_s8 }
  0x26   : > { %s1276_s9 = scalar_lea.sflag [#allocation7], %s238_s17  ;;  %s902_s14 = scalar_lea.vmem %s252_s8, 2048 }
  0x27   : > { %s1552_s11 = scalar_select %p1272_p9, 1, 0 }
  0x28   : > { %p1519_p10 = pneg %p1272_p9  ;;  %p903_p11 = scmp.ne.s32.totalorder %s252_s8, %s902_s14 }
  0x2a   : > { %s250_s10 = scalar_lea.hbm %s1551_s3, %s719_s1  ;;  %p905_p12 = pnand %p903_p11, %p1519_p10 }
  0x2b   : > { %s1123_s1 = smov [#allocation6]  }
  0x2c   : > { %p906_p13 = pneg %p905_p12  ;;  %s907_s2 = sshll.u32 %s1123_s1, 4  ;;  %s908_s2 = int_to_ptr.vmem [resolvable:$false] %s907_s2 }
  0x2d   : > { %s909_s4 = scalar_lea.vmem %s908_s2, 4096  ;;  %p910_p0 = scmp.lt.s32.totalorder %s252_s8, %s908_s2 }
  0x2e   : > { %p911_p1 = scmp.lt.s32.totalorder %s909_s4, %s902_s14 }
  0x30   : > { %p912_p2 = por %p911_p1, %p910_p0 }
  0x32   : > { %p913_p3 = pnand %p912_p2, %p906_p13 }
  0x34   : > { %916 = shalt.err (!%p913_p3)
}
  0x35   : > { %s1124_s27 = smov 512   ;;  %s1125_s12 = smov 128  }
  0x36   : > { %s1126_s13 = smov 8   ;;  %s1287_s15 = sadd.s32 4294967295, %s1121_s6  }
  0x37   : > { %736 = dma.hbm_to_vmem [thread:$0]  (!%p1272_p9), %s250_s10, 2048, %s252_s8, %s1276_s9, %s1124_s27, %s1125_s12, %s1126_s13  }
  0x38   : > { %s680_s17 = sadd.s32 4294967294, %s1121_s6   ;;  %p61_p4 = scmp.ne.s32.totalorder %s1097_s25, %s1093_s24 }
  0x39   : > { %p62_p5 = scmp.eq.s32.totalorder %s1287_s15, 0  ;;  %p133_p6 = scmp.ne.s32.totalorder %s1085_s22, %s1081_s21 }
  0x3a   : > { %s182_s14 = sadd.s32 1, %s1077_s20  ;;  %p192_p7 = scmp.ne.s32.totalorder %s1077_s20, %s1073_s19 }
  0x3b   : > { %p1298_p11 = por %p62_p5, %p61_p4  ;;  %p1302_p12 = por %p133_p6, %p62_p5 }
  0x3c   : > { %s1309_s8 = scalar_select %p1255_p8, %s1077_s20, %s182_s14  }
  0x3d   : > { %s1553_s1 = scalar_select %p1298_p11, 1, 0 }
  0x3e   : > { %s1554_s2 = scalar_select %p1302_p12, 1, 0 }
  0x3f   : > { %1555 = sst [smem:[#allocation24_spill]] %s1309_s8  ;;  %p193_p13 = scmp.eq.s32.totalorder %s1287_s15, 11 }
  0x40   : > { %p198_p0 = scmp.ne.s32.totalorder %s1073_s19, %s1069_s18  ;;  %p199_p1 = scmp.eq.s32.totalorder %s680_s17, 11 }
  0x41   : > { %p681_p2 = scmp.ge.s32.totalorder %s1121_s6, 1  ;;  %p1315_p3 = por %p193_p13, %p192_p7 }
  0x42   : > { %p206_p4 = scmp.lt.s32.totalorder %s1121_s6, 13  ;;  %p1320_p10 = por %p199_p1, %p198_p0 }
  0x43   : > { %s1556_s21 = scalar_select %p1315_p3, 1, 0 }
  0x44   : > { %s1557_s24 = scalar_select %p1320_p10, 1, 0 }
  0x45   : > { %s682_s10 = sshll.u32 %s1109_s28, 6  ;;  %p1325_p5 = pnand %p681_p2, %p206_p4 }
  0x46   : > { %s1332_s12 = scalar_lea.hbm %s1510_s0, %s682_s10  ;;  %s687_s13 = sshll.u32 %s240_s5, 1 }
  0x47   : > { %s1558_s16 = scalar_select %p1325_p5, 1, 0 }
  0x48   : > { %p729_p8 = pneg %p1325_p5  ;;  %s1127_s17 = smov [#allocation3]  }
  0x49   : > { %s221_s14 = sshll.u32 %s1127_s17, 4  ;;  %s720_s4 = sshll.u32 %s1113_s29, 5  ;;  %s222_s14 = int_to_ptr.vmem [resolvable:$true] %s221_s14 }
  0x4a   : > { %p1340_p6 = pnand %p729_p8, %p1298_p11  ;;  %s1560_s30 = sld [smem:[#allocation28_spill]] }
  0x4b   : > { %s265_s26 = scalar_lea.vmem [#allocation8], %s687_s13  ;;  %s917_s25 = scalar_lea.hbm %s1332_s12, 64 }
  0x4c   : > { %s275_s5 = sshll.u32 %s265_s26, 4  ;;  %p918_p7 = scmp.ne.s32.totalorder %s1332_s12, %s917_s25  ;;  %s1350_s5 = int_to_ptr.vmem [resolvable:$true] %s275_s5 }
  0x4d   : > { %p919_p13 = pneg %p1340_p6  ;;  %s922_s8 = scalar_lea.hbm %s1510_s0, 192 }
  0x4e   : > { %p923_p2 = scmp.lt.s32.totalorder %s1332_s12, %s1510_s0  ;;  %p924_p4 = scmp.lt.s32.totalorder %s922_s8, %s917_s25 }
  0x4f   : > { %p920_p0 = pnand %p919_p13, %p918_p7 }
  0x50   : > { %s1348_s7 = scalar_lea.hbm %s1560_s30, %s720_s4  ;;  %p925_p8 = por %p924_p4, %p923_p2 }
  0x51   : > { %p921_p1 = pneg %p920_p0 }
  0x53   : > { %p926_p10 = pnand %p925_p8, %p921_p1 }
  0x55   : > { %929 = shalt.err (!%p926_p10)
}
  0x56   : > { %s930_s26 = scalar_lea.vmem %s222_s14, 64  ;;  %p938_p5 = scmp.lt.s32.totalorder %s222_s14, %s222_s14 }
  0x57   : > { %p931_p3 = scmp.ne.s32.totalorder %s222_s14, %s930_s26  ;;  %p939_p9 = scmp.lt.s32.totalorder %s930_s26, %s930_s26 }
  0x59   : > { %p933_p12 = pnand %p931_p3, %p919_p13  ;;  %p940_p7 = por %p939_p9, %p938_p5 }
  0x5b   : > { %p934_p11 = pneg %p933_p12 }
  0x5d   : > { %p941_p0 = pnand %p940_p7, %p934_p11 }
  0x5f   : > { %944 = shalt.err (!%p941_p0)
}
  0x60   : > { %732 = dma.hbm_to_vmem [thread:$0]  (!%p1340_p6), %s1332_s12, 64, %s222_s14, [#allocation4]  }
  0x61   : > { %s958_s20 = scalar_lea.vmem %s1350_s5, 32  ;;  %p1561_p10 = scmp.ne.s32.totalorder %s1552_s11, 0 }
  0x62   : > { %p959_p1 = scmp.ne.s32.totalorder %s1350_s5, %s958_s20  ;;  %s1128_s23 = smov [#allocation8]  }
  0x63   : > { %p1562_p2 = pneg %p1561_p10  ;;  %s963_s25 = sshll.u32 %s1128_s23, 4  ;;  %s964_s25 = int_to_ptr.vmem [resolvable:$false] %s963_s25 }
  0x64   : > { %s965_s29 = scalar_lea.vmem %s964_s25, 64  ;;  %p966_p9 = scmp.lt.s32.totalorder %s1350_s5, %s964_s25 }
  0x65   : > { %p961_p4 = pnand %p959_p1, %p1562_p2  ;;  %p967_p11 = scmp.lt.s32.totalorder %s965_s29, %s958_s20 }
  0x67   : > { %p962_p3 = pneg %p961_p4  ;;  %p968_p12 = por %p967_p11, %p966_p9 }
  0x69   : > { %p969_p5 = pnand %p968_p12, %p962_p3 }
  0x6b   : > { %972 = shalt.err (!%p969_p5)
}
  0x6c   : > { %739 = dma.hbm_to_vmem [thread:$0]  (!%p1561_p10), %s1348_s7, 32, %s1350_s5, %s1276_s9  }
  0x6d   : > { %p1563_p6 = scmp.ne.s32.totalorder %s1558_s16, 0 }
  0x6e   : > { %p1564_p13 = scmp.ne.s32.totalorder (!%p1563_p6), %s1553_s1, 0 }
  0x6f   : > { %284 = sbr.rel (%p1563_p6) target bundleno = 693 (0x2b5), region = 40 }
  0x74   : > { %1056 = dma.done.wait (%p1564_p13), [#allocation4], 64  }
  0x75   : > { %1058 = vsyncadd (%p1564_p13), [#allocation4], 4294967232  ;;  %s290_s3 = sand.u32 1, %s1287_s15   ;;  %s292_s30 = sand.u32 1, %s1085_s22  }
  0x76   : > { %s691_s8 = sshll.u32 %s292_s30, 7  ;;  %s291_s11 = scalar_lea.sflag [#allocation7], %s290_s3 }
  0x77   : > { %s1385_s12 = scalar_lea.vmem [#allocation6], %s691_s8  ;;  %p1565_p8 = scmp.ne.s32.totalorder %s1554_s2, 0 }
  0x79   : > { %1060 = dma.done.wait (%p1565_p8), %s291_s11, 2080  }
  0x7a   : > { %1062 = vsyncadd (%p1565_p8), %s291_s11, 4294965216  ;;  %s1391_s7 = sshll.u32 %s292_s30, 1  ;;  %s332_s9 = sand.u32 1, %s1073_s19  }
  0x7b   : > { %s693_s1 = sshll.u32 %s332_s9, 4  ;;  %s303_s16 = scalar_lea.vmem [#allocation8], %s1391_s7 }
  0x7c   : > { %s1397_s15 = scalar_lea.vmem [#allocation9], %s693_s1  ;;  %s1566_s13 = sld [smem:[#allocation17_spill]] }
  0x82   : > { %p694_p7 = scmp.ne.s32.totalorder %s1566_s13, 0 }
  0x83   : > { %s1567_s4 = sld [smem:[#allocation25_spill]] (!%p694_p7) }
  0x84   : > { %348 = sbr.rel (%p694_p7) target bundleno = 449 (0x1c1), region = 56  ;;  %s1568_s5 = sld [smem:[#allocation26_spill]] (!%p694_p7) }
  0x89   : > { %v349_v0 = vld [vmem:[#allocation3] sm:$0xf]  ;;  %v695_v10 = vld [vmem:[%s1567_s4] ss:$0 sm:$0xff] }
  0x8a   : > { %v350_v1 = vunpack.c.l.bf16 %v349_v0  ;;  %v696_v12 = vld [vmem:[%s1568_s5] ss:$0 sm:$0xff] }
  0x8c   : > { %351 = vadd.xlane.f32.xlu0 %v350_v1 }
 0x115   : > { %v352_v2 = vpop.xlane.xlu0 %351 }
 0x116   : > { %v354_v3 = vmul.f32 0.0078125, %v352_v2 }
 0x118   : > { %v355_v4 = vsub.f32 %v350_v1, %v354_v3 }
 0x11a   : > { %v356_v5 = vmul.f32 %v355_v4, %v355_v4 }
 0x11c   : > { %357 = vadd.xlane.f32.xlu0 %v356_v5 }
 0x1a5   : > { %v358_v6 = vpop.xlane.xlu0 %357 }
 0x1a6   : > { %v359_v7 = vmul.f32 0.0078125, %v358_v6 }
 0x1a8   : > { %v360_v8 = vadd.f32 1e-05, %v359_v7 }
 0x1aa   : > { %863 = vrsqrt.f32 %v360_v8 }
 0x1b7   : > { %v864_v9 = vpop.eup %863 }
 0x1b8   : > { %v362_v11 = vmul.f32 %v864_v9, %v355_v4 }
 0x1ba   : > { %v370_v13 = vmul.f32 %v695_v10, %v362_v11 }
 0x1bc   : > { %v378_v14 = vadd.f32 %v696_v12, %v370_v13 }
 0x1be   : > { %v379_v15 = vpack.c.bf16 %v378_v14, %v378_v14 }
 0x1c0   : > { %380 = vst [vmem:[#allocation2] sm:$0xf] %v379_v15 }
 0x1c1 PF: > { %v865_v16 = vld [vmem:[%s1385_s12 + $0x74] ss:$8 sps:$4 sm:$0xff]   ;;  %v867_v17 = vld [vmem:[%s1385_s12 + $0x70] ss:$8 sps:$4 sm:$0xff]   ;;  %v1129_v18 = vmov 0   ;;  %s1569_s17 = sld [smem:[#allocation17_spill]]  ;;  %v400_v34 = vlaneseq }
 0x1c2   : > { %522 = vmatprep.mubr.bf16.mxu0 %v1129_v18  ;;  %490 = vmatprep.subr.bf16.mxu0 %v865_v16  ;;  %v868_v19 = vld [vmem:[%s1385_s12 + $0x64] ss:$8 sps:$4 sm:$0xff]   ;;  %v870_v20 = vld [vmem:[%s1385_s12 + $0x60] ss:$8 sps:$4 sm:$0xff]   ;;  %v871_v21 = vld [vmem:[%s1385_s12 + $0x54] ss:$8 sps:$4 sm:$0xff]  }
 0x1c3   : > { %491 = vmatpush1.bf16.msra.mxu0 %v867_v17  ;;  %v873_v22 = vld [vmem:[%s1385_s12 + $0x50] ss:$8 sps:$4 sm:$0xff]   ;;  %v874_v23 = vld [vmem:[%s1385_s12 + $0x44] ss:$8 sps:$4 sm:$0xff]   ;;  %v876_v24 = vld [vmem:[%s1385_s12 + $0x40] ss:$8 sps:$4 sm:$0xff]  }
 0x1c4   : > { %492 = vmatprep.subr.bf16.mxu0 %v868_v19  ;;  %v877_v25 = vld [vmem:[%s1385_s12 + $0x34] ss:$8 sps:$4 sm:$0xff]   ;;  %v879_v26 = vld [vmem:[%s1385_s12 + $0x30] ss:$8 sps:$4 sm:$0xff]   ;;  %v880_v27 = vld [vmem:[%s1385_s12 + $0x24] ss:$8 sps:$4 sm:$0xff]  }
 0x1c5   : > { %v882_v28 = vld [vmem:[%s1385_s12 + $0x20] ss:$8 sps:$4 sm:$0xff]   ;;  %v883_v29 = vld [vmem:[%s1385_s12 + $0x14] ss:$8 sps:$4 sm:$0xff]   ;;  %v885_v30 = vld [vmem:[%s1385_s12 + $0x10] ss:$8 sps:$4 sm:$0xff]  }
 0x1c6   : > { %v886_v31 = vld [vmem:[%s1385_s12 + $0x4] ss:$8 sps:$4 sm:$0xff]   ;;  %v888_v32 = vld [vmem:[%s1385_s12] ss:$8 sps:$4 sm:$0xff]   ;;  %v401_v35 = vshrl.u32 %v400_v34, 7  ;;  %s715_s20 = sshll.u32 %s1109_s28, 3 }
 0x1c7   : > { %493 = vmatpush1.bf16.msra.mxu0 %v870_v20  ;;  %v381_v33 = vld [vmem:[#allocation2] sm:$0xf]  ;;  %v398_v37 = vld [vmem:[%s303_s16] sm:$0x3]  ;;  %s714_s26 = sshll.u32 %s1569_s17, 1  ;;  %s552_s29 = sshll.u32 %s1397_s15, 4  ;;  %s1433_s29 = int_to_ptr.vmem [resolvable:$true] %s552_s29 }
 0x1c8   : > { %494 = vmatprep.subr.bf16.mxu0 %v871_v21  ;;  %v402_v36 = vsub.s32 0, %v401_v35  ;;  %v406_v38 = vsub.s32 1, %v401_v35  ;;  %s548_s23 = sadd.s32 %s715_s20, %s714_s26  ;;  %s1570_s8 = sld [smem:[#allocation29_spill]] }
 0x1c9   : > { %s716_s25 = sshll.u32 %s548_s23, 7  ;;  %s534_s28 = scalar_lea.sflag [#allocation5], %s332_s9 }
 0x1ca   : > { %v403_v39 = vrot.slane %v398_v37, %v402_v36  ;;  %v407_v40 = vrot.slane %v398_v37, %v406_v38  ;;  %s973_s12 = scalar_lea.vmem %s1433_s29, 256  ;;  %p1571_p1 = scmp.ne.s32.totalorder %s1556_s21, 0 }
 0x1cb   : > { %495 = vmatpush1.bf16.msra.mxu0 %v873_v22  ;;  %p974_p0 = scmp.ne.s32.totalorder %s1433_s29, %s973_s12  ;;  %s1130_s7 = smov [#allocation9]  }
 0x1cc   : > { %496 = vmatprep.subr.bf16.mxu0 %v874_v23  ;;  %s977_s1 = sshll.u32 %s1130_s7, 4  ;;  %s978_s1 = int_to_ptr.vmem [resolvable:$false] %s977_s1 }
 0x1cd   : > { %p975_p10 = pnand %p974_p0, %p1571_p1  ;;  %s979_s16 = scalar_lea.vmem %s978_s1, 512 }
 0x1ce   : > { %s1431_s11 = scalar_lea.hbm %s1570_s8, %s716_s25  ;;  %p980_p4 = scmp.lt.s32.totalorder %s1433_s29, %s978_s1 }
 0x1cf   : > { %497 = vmatpush1.bf16.msra.mxu0 %v876_v24  ;;  %p976_p2 = pneg %p975_p10  ;;  %p981_p3 = scmp.lt.s32.totalorder %s979_s16, %s973_s12 }
 0x1d0   : > { %498 = vmatprep.subr.bf16.mxu0 %v877_v25 }
 0x1d1   : > { %p982_p9 = por %p981_p3, %p980_p4 }
 0x1d3   : > { %499 = vmatpush1.bf16.msra.mxu0 %v879_v26  ;;  %p983_p11 = pnand %p982_p9, %p976_p2 }
 0x1d4   : > { %500 = vmatprep.subr.bf16.mxu0 %v880_v27 }
 0x1d7   : > { %501 = vmatpush1.bf16.msra.mxu0 %v882_v28 }
 0x1d8   : > { %502 = vmatprep.subr.bf16.mxu0 %v883_v29 }
 0x1db   : > { %503 = vmatpush1.bf16.msra.mxu0 %v885_v30 }
 0x1dc   : > { %504 = vmatprep.subr.bf16.mxu0 %v886_v31 }
 0x1df   : > { %505 = vmatpush1.bf16.msra.mxu0 %v888_v32 }
 0x1e2   : > { %523 = vmatmul.mubr.bf16.vlgmr.msra.gmra.mxu0 %v381_v33 }
 0x2a2   : > { %v524_v41 = vpop.f32.mrf.mxu0 }
 0x2a3   : > { %v525_v42 = vadd.f32 %v524_v41, %v403_v39 }
 0x2a4   : > { %v526_v43 = vpop.f32.mrf.mxu0 }
 0x2a5   : > { %531 = vst [vmem:[%s1397_s15] sm:$0xff] %v525_v42  ;;  %v527_v44 = vadd.f32 %v526_v43, %v407_v40 }
 0x2a6   : > { %v528_v45 = vpop.f32.mrf.mxu0 }
 0x2a7   : > { %532 = vst [vmem:[%s1397_s15 + $0x8] sm:$0xff] %v527_v44 }
 0x2a8   : > { %v529_v46 = vpop.f32.mrf.mxu0 }
 0x2a9   : > { %986 = shalt.err (!%p983_p11)
}
 0x2aa   : > { %s987_s15 = scalar_lea.hbm %s1431_s11, 256  ;;  %s991_s2 = scalar_lea.hbm %s1570_s8, 3072 }
 0x2ab   : > { %p988_p12 = scmp.ne.s32.totalorder %s1431_s11, %s987_s15  ;;  %p992_p13 = scmp.lt.s32.totalorder %s1431_s11, %s1570_s8 }
 0x2ac   : > { %p993_p8 = scmp.lt.s32.totalorder %s991_s2, %s987_s15 }
 0x2ad   : > { %p989_p5 = pnand %p988_p12, %p1571_p1 }
 0x2ae   : > { %p994_p7 = por %p993_p8, %p992_p13 }
 0x2af   : > { %p990_p6 = pneg %p989_p5 }
 0x2b1   : > { %p995_p0 = pnand %p994_p7, %p990_p6 }
 0x2b3   : > { %998 = shalt.err (!%p995_p0)
}
 0x2b4   : > { %727 = dma.vmem_to_hbm [thread:$0]  (%p1571_p1), %s1433_s29, 256, %s1431_s11, %s534_s28  }
 0x2b5 PF: > { %p745_p10 = scmp.ge.s32.totalorder %s1121_s6, 2  ;;  %s564_s27 = sand.u32 1, %s1069_s18  }
 0x2b6   : > { %p1572_p2 = scmp.ne.s32.totalorder %s1557_s24, 0  ;;  %s565_s10 = scalar_lea.sflag [#allocation5], %s564_s27 }
 0x2b8   : > { %p741_p4 = pnand %p745_p10, %p1572_p2 }
 0x2ba   : > { %p742_p3 = pneg %p741_p4 }
 0x2bc   : > { %1064 = dma.done.wait (%p742_p3), %s565_s10, 256  }
 0x2bd   : > { %1066 = vsyncadd (%p742_p3), %s565_s10, 4294967040  ;;  %s22_s6 = sadd.s32 1, %s1121_s6   ;;  %s1574_s21 = sld [smem:[#allocation13_spill]] }
 0x2be   : > { %p1463_p9 = scmp.ge.s32.totalorder %s22_s6, 14   ;;  %s1575_s20 = sld [smem:[#allocation24_spill]] }
 0x2bf   : > { %s1576_s17 = sld [smem:[#allocation14_spill]]  ;;  %s1585_s18 = smov %s1073_s19 }
 0x2c0   : > { %s1577_s23 = sld [smem:[#allocation22_spill]] }
 0x2c1   : > { %s1578_s24 = sld [smem:[#allocation15_spill]] }
 0x2c2   : > { %s1579_s25 = sld [smem:[#allocation16_spill]] }
 0x2c3   : > { %s1580_s26 = sld [smem:[#allocation23_spill]]  ;;  %s1586_s19 = smov %s1574_s21 }
 0x2c4   : > { %s1581_s27 = sld [smem:[#allocation18_spill]]  ;;  %s1587_s21 = smov %s1085_s22 }
 0x2c5   : > { %s1582_s28 = sld [smem:[#allocation19_spill]]  ;;  %s1588_s22 = smov %s1576_s17 }
 0x2c6   : > { %s1583_s29 = sld [smem:[#allocation20_spill]]  ;;  %21 = sbr.rel (!%p1463_p9) target bundleno = 17 (0x11), region = 106 }
 0x2c7   : > { %s1584_s30 = sld [smem:[#allocation21_spill]] }
 0x2cb   :  { %570 = vsyncpa [#allocation4], 1 }
 0x2cc   :  { %572 = vsyncpa [#allocation4 + $0x1], 1 }
 0x2cd   :  { %573 = vsyncpa [#allocation7], 1 }
 0x2ce   :  { %575 = vsyncpa [#allocation7 + $0x1], 1 }
 0x2cf   :  { %576 = vsyncpa [#allocation5], 1 }
 0x2d0   :  { %578 = vsyncpa [#allocation5 + $0x1], 1 }

// kernel: tpu_custom_call.1
= control target key start
LH: loop header
LB: loop body
LE: loop exit
PB: predicated region body
PF: predicated region fallthrough
CT: control target
= control target key end

     0   :  { %s1521_s0 = inlined_call_operand.hbm [shape: bf16[24,128], index: 0, kind: input, shape index: {}]   ;;  %s1522_s1 = inlined_call_operand.vmem [shape: f32[1,128], index: 1, kind: input, shape index: {}]   ;;  %s1523_s2 = inlined_call_operand.vmem [shape: f32[1,128], index: 2, kind: input, shape index: {}]   ;;  %s1524_s3 = inlined_call_operand.hbm [shape: bf16[128,1024], index: 3, kind: input, shape index: {}]   ;;  %s1525_s4 = inlined_call_operand.hbm [shape: f32[1,1024], index: 4, kind: input, shape index: {}]   ;;  %s1526_s5 = inlined_call_operand.hbm [shape: f32[24,1024], index: 5, kind: output, shape index: {}]  }
   0x1   :  { %1536 = sst [smem:[#allocation23_spill]] %s1521_s0 }
   0x2   :  { %1537 = sst [smem:[#allocation24_spill]] %s1522_s1 }
   0x3   :  { %1538 = sst [smem:[#allocation25_spill]] %s1523_s2 }
   0x4   :  { %1539 = sst [smem:[#allocation26_spill]] %s1524_s3 }
   0x5   :  { %1540 = sst [smem:[#allocation27_spill]] %s1526_s5 }
   0x6   :  { %10 = vsyncpa [#allocation4], 0 }
   0x7   :  { %12 = vsyncpa [#allocation4 + $0x1], 0 }
   0x8   :  { %13 = vsyncpa [#allocation7], 0 }
   0x9   :  { %15 = vsyncpa [#allocation7 + $0x1], 0 }
   0xa   :  { %16 = vsyncpa [#allocation5], 0 }
   0xb   :  { %18 = vsyncpa [#allocation5 + $0x1], 0  ;;  %s1187_s18 = smov 0   ;;  %s1189_s19 = smov 0  }
   0xc   :  { %s1191_s20 = smov 0   ;;  %s1193_s21 = smov 0  }
   0xd   :  { %s1195_s22 = smov 0   ;;  %s1197_s23 = smov 0  }
   0xe   :  { %s1199_s24 = smov 0   ;;  %s1201_s25 = smov 0  }
   0xf   :  { %s1203_s26 = smov 0   ;;  %s1205_s27 = smov 0  }
  0x10   :  { %s1207_s28 = smov 0   ;;  %s1209_s29 = smov 0  }
  0x11   :  { %s1211_s30 = smov 0   ;;  %s1213_s6 = smov 0  }
  0x12 LB: > { %1541 = sst [smem:[#allocation13_spill]] %s1095_s18  ;;  %p58_p0 = scmp.eq.s32.totalorder %s1147_s6, 0  ;;  %s1147_s6 = sphi %s1213_s6, %s24_s6   ;;  %s1143_s30 = sphi %s1211_s30, %s1580_s30   ;;  %s1139_s29 = sphi %s1209_s29, %s1590_s29   ;;  %s1135_s28 = sphi %s1207_s28, %s1578_s28   ;;  %s1131_s27 = sphi %s1205_s27, %s1589_s27   ;;  %s1127_s26 = sphi %s1203_s26, %s1588_s26   ;;  %s1123_s25 = sphi %s1201_s25, %s1587_s25   ;;  %s1119_s24 = sphi %s1199_s24, %s1586_s24   ;;  %s1115_s23 = sphi %s1197_s23, %s1585_s23   ;;  %s1111_s22 = sphi %s1195_s22, %s1584_s22   ;;  %s1107_s21 = sphi %s1193_s21, %s1583_s21   ;;  %s1103_s20 = sphi %s1191_s20, %s1575_s20   ;;  %s1099_s19 = sphi %s1189_s19, %s1582_s19   ;;  %s1095_s18 = sphi %s1187_s18, %s1581_s18  }
  0x13   : > { %1542 = sst [smem:[#allocation14_spill]] %s1103_s20  ;;  %p129_p1 = scmp.ne.s32.totalorder %s1115_s23, %s1111_s22 }
  0x14   : > { %1543 = sst [smem:[#allocation15_spill]] %s1131_s27  ;;  %p1531_p2 = scmp.lt.s32.totalorder %s1147_s6, 12 }
  0x15   : > { %1544 = sst [smem:[#allocation16_spill]] %s1135_s28  ;;  %p131_p3 = por %p129_p1, %p58_p0 }
  0x16   : > { %1545 = sst [smem:[#allocation17_spill]] %s1143_s30  ;;  %s245_s7 = sand.u32 1, %s1147_s6  }
  0x17   : > { %s1527_s8 = sand.u32 1, %s1115_s23   ;;  %s747_s10 = sshll.u32 %s1139_s29, 7 }
  0x18   : > { %s711_s9 = sshll.u32 %s1527_s8, 7  ;;  %s1546_s3 = sld [smem:[#allocation26_spill]] }
  0x19   : > { %s249_s14 = scalar_lea.vmem [#allocation6], %s711_s9  ;;  %p1273_p4 = pnand %p1531_p2, %p131_p3 }
  0x1a   : > { %s258_s15 = sshll.u32 %s249_s14, 4  ;;  %p717_p5 = scmp.ge.s32.totalorder %s1147_s6, 1  ;;  %s259_s15 = int_to_ptr.vmem [resolvable:$true] %s258_s15 }
  0x1b   : > { %s1278_s17 = scalar_lea.sflag [#allocation7], %s245_s7  ;;  %p1530_p6 = pneg %p1273_p4 }
  0x1c   : > { %s928_s8 = scalar_lea.vmem %s259_s15, 2048  ;;  %s1149_s9 = smov [#allocation6]  }
  0x1d   : > { %p929_p7 = scmp.ne.s32.totalorder %s259_s15, %s928_s8 }
  0x1e   : > { %s257_s13 = scalar_lea.hbm %s1546_s3, %s747_s10  ;;  %s933_s10 = sshll.u32 %s1149_s9, 4  ;;  %s934_s10 = int_to_ptr.vmem [resolvable:$false] %s933_s10 }
  0x1f   : > { %p931_p8 = pnand %p929_p7, %p1530_p6  ;;  %s935_s11 = scalar_lea.vmem %s934_s10, 4096 }
  0x20   : > { %p936_p10 = scmp.lt.s32.totalorder %s259_s15, %s934_s10  ;;  %p937_p11 = scmp.lt.s32.totalorder %s935_s11, %s928_s8 }
  0x21   : > { %p932_p9 = pneg %p931_p8 }
  0x22   : > { %p938_p12 = por %p937_p11, %p936_p10 }
  0x24   : > { %p939_p13 = pnand %p938_p12, %p932_p9 }
  0x26   : > { %942 = shalt.err (!%p939_p13)
}
  0x27   : > { %s1150_s12 = smov 512   ;;  %s1151_s7 = smov 128  }
  0x28   : > { %s1152_s8 = smov 8   ;;  %p287_p1 = scmp.lt.s32.totalorder %s1147_s6, 13 }
  0x29   : > { %763 = dma.hbm_to_vmem [thread:$0]  (!%p1273_p4), %s257_s13, 2048, %s259_s15, %s1278_s17, %s1150_s12, %s1151_s7, %s1152_s8  }
  0x2a   : > { %p1291_p3 = pnand %p717_p5, %p287_p1  ;;  %s1296_s9 = sadd.s32 4294967295, %s1147_s6  }
  0x2b   : > { %s36_s11 = sadd.s32 1, %s1139_s29  ;;  %s39_s3 = sadd.s32 1, %s1143_s30 }
  0x2c   : > { %p37_p7 = scmp.ge.s32.totalorder %s36_s11, 4  ;;  %s50_s13 = sadd.s32 1, %s1127_s26 }
  0x2d   : > { %p57_p8 = scmp.ne.s32.totalorder %s1127_s26, %s1123_s25  ;;  %p63_p9 = scmp.ne.s32.totalorder %s1123_s25, %s1119_s24 }
  0x2e   : > { %s1592_s11 = smov (%p37_p7, %s36_s11), 0  ;;  %s1594_s3 = smov (!%p37_p7, %s39_s3), %s1143_s30 }
  0x2f   : > { %1549 = sst [smem:[#allocation18_spill]] %s1592_s11  ;;  %p1311_p5 = por %p58_p0, %p57_p8 }
  0x30   : > { %p64_p10 = scmp.eq.s32.totalorder %s1296_s9, 0  ;;  %p41_p11 = scmp.ge.s32.totalorder %s1594_s3, 3 }
  0x31   : > { %s119_s12 = ssub.s32 %s1139_s29, %s1592_s11  ;;  %s122_s7 = sadd.s32 1, %s1115_s23 }
  0x32   : > { %p1318_p12 = por %p64_p10, %p63_p9  ;;  %p120_p13 = scmp.eq.s32.totalorder %s119_s12, 0 }
  0x33   : > { %s1596_s3 = smov (%p41_p11, %s1594_s3), 0  ;;  %p135_p0 = scmp.ne.s32.totalorder %s1111_s22, %s1107_s21 }
  0x34   : > { %1552 = sst [smem:[#allocation19_spill]] %s1596_s3  ;;  %s47_s8 = ssub.s32 %s1143_s30, %s1596_s3 }
  0x35   : > { %s184_s10 = sadd.s32 1, %s1103_s20  ;;  %p48_p1 = scmp.eq.s32.totalorder %s47_s8, 0 }
  0x36   : > { %p1330_p7 = por %p135_p0, %p64_p10  ;;  %s181_s2 = sor.u32 %s119_s12, %s47_s8 }
  0x37   : > { %s1335_s5 = scalar_select %p120_p13, %s1115_s23, %s122_s7  }
  0x38   : > { %s1338_s28 = scalar_select %p48_p1, %s1127_s26, %s50_s13  }
  0x39   : > { %1554 = sst [smem:[#allocation20_spill]] %s1335_s5  ;;  %p194_p8 = scmp.ne.s32.totalorder %s1103_s20, %s1099_s19 }
  0x3a   : > { %1555 = sst [smem:[#allocation21_spill]] %s1338_s28  ;;  %p182_p9 = scmp.eq.s32.totalorder %s181_s2, 0 }
  0x3b   : > { %p195_p11 = scmp.eq.s32.totalorder %s1296_s9, 11  ;;  %p200_p6 = scmp.ne.s32.totalorder %s1099_s19, %s1095_s18 }
  0x3c   : > { %s1556_s21 = sadd.s32 4294967294, %s1147_s6   ;;  %s227_s13 = sand.u32 1, %s1127_s26  }
  0x3d   : > { %p201_p2 = scmp.eq.s32.totalorder %s1556_s21, 11  ;;  %p1350_p10 = por %p195_p11, %p194_p8 }
  0x3e   : > { %s1348_s3 = scalar_select %p182_p9, %s1103_s20, %s184_s10  }
  0x3f   : > { %p1354_p13 = por %p201_p2, %p200_p6  ;;  %s710_s28 = sshll.u32 %s1143_s30, 6 }
  0x40   : > { %1557 = sst [smem:[#allocation22_spill]] %s1348_s3  ;;  %s709_s12 = sshll.u32 %s227_s13, 2 }
  0x41   : > { %s1559_s7 = scalar_select %p1354_p13, 1, 0 }
  0x42   : > { %s1560_s0 = sld [smem:[#allocation23_spill]]  ;;  %s231_s18 = scalar_lea.vmem [#allocation3], %s709_s12 }
  0x43   : > { %s238_s27 = sshll.u32 %s231_s18, 4  ;;  %p1561_p0 = scmp.lt.s32.totalorder %s1147_s6, 12  ;;  %s239_s27 = int_to_ptr.vmem [resolvable:$true] %s238_s27 }
  0x44   : > { %s1563_s21 = sand.u32 1, %s1115_s23   ;;  %s228_s20 = scalar_lea.sflag [#allocation4], %s227_s13 }
  0x45   : > { %p1367_p1 = pnand %p1561_p0, %p1311_p5  ;;  %s714_s3 = sshll.u32 %s1563_s21, 1 }
  0x46   : > { %s956_s30 = scalar_lea.vmem %s239_s27, 64  ;;  %s1153_s5 = smov [#allocation3]  }
  0x47   : > { %p945_p2 = pneg %p1367_p1  ;;  %p957_p6 = scmp.ne.s32.totalorder %s239_s27, %s956_s30 }
  0x48   : > { %s236_s2 = scalar_lea.hbm %s1560_s0, %s710_s28  ;;  %s961_s28 = sshll.u32 %s1153_s5, 4  ;;  %s962_s28 = int_to_ptr.vmem [resolvable:$false] %s961_s28 }
  0x49   : > { %p959_p8 = pnand %p957_p6, %p945_p2  ;;  %s963_s18 = scalar_lea.vmem %s962_s28, 128 }
  0x4a   : > { %p964_p11 = scmp.lt.s32.totalorder %s239_s27, %s962_s28  ;;  %p965_p5 = scmp.lt.s32.totalorder %s963_s18, %s956_s30 }
  0x4b   : > { %p960_p9 = pneg %p959_p8 }
  0x4c   : > { %p966_p0 = por %p965_p5, %p964_p11 }
  0x4e   : > { %p967_p13 = pnand %p966_p0, %p960_p9 }
  0x50   : > { %970 = shalt.err (!%p967_p13)
}
  0x51   : > { %760 = dma.hbm_to_vmem [thread:$0]  (!%p1367_p1), %s236_s2, 64, %s239_s27, %s228_s20  }
  0x52   : > { %s748_s15 = sshll.u32 %s1139_s29, 5  ;;  %s272_s13 = scalar_lea.vmem [#allocation8], %s714_s3 }
  0x53   : > { %s282_s12 = sshll.u32 %s272_s13, 4  ;;  %s280_s0 = scalar_lea.hbm %s1525_s4, %s748_s15  ;;  %s283_s12 = int_to_ptr.vmem [resolvable:$true] %s282_s12 }
  0x54   : > { %s984_s5 = scalar_lea.vmem %s283_s12, 32  ;;  %p1564_p6 = pneg %p1273_p4 }
  0x55   : > { %p985_p2 = scmp.ne.s32.totalorder %s283_s12, %s984_s5  ;;  %s1154_s30 = smov [#allocation8]  }
  0x56   : > { %s989_s28 = sshll.u32 %s1154_s30, 4  ;;  %s990_s28 = int_to_ptr.vmem [resolvable:$false] %s989_s28 }
  0x57   : > { %p987_p8 = pnand %p985_p2, %p1564_p6  ;;  %s991_s10 = scalar_lea.vmem %s990_s28, 64 }
  0x58   : > { %p992_p13 = scmp.lt.s32.totalorder %s283_s12, %s990_s28  ;;  %p993_p1 = scmp.lt.s32.totalorder %s991_s10, %s984_s5 }
  0x59   : > { %p988_p9 = pneg %p987_p8 }
  0x5a   : > { %p994_p11 = por %p993_p1, %p992_p13 }
  0x5c   : > { %p995_p5 = pnand %p994_p11, %p988_p9 }
  0x5e   : > { %998 = shalt.err (!%p995_p5)
}
  0x5f   : > { %766 = dma.hbm_to_vmem [thread:$0]  (!%p1273_p4), %s280_s0, 32, %s283_s12, %s1278_s17  }
  0x60   : > { %291 = sbr.rel (%p1291_p3) target bundleno = 677 (0x2a5), region = 40  ;;  %s293_s3 = sand.u32 (!%p1291_p3), 1, %s1123_s25  }
  0x61   : > { %s718_s20 = sshll.u32 (!%p1291_p3), %s293_s3, 2  ;;  %s294_s27 = scalar_lea.sflag (!%p1291_p3), [#allocation4], %s293_s3 }
  0x62   : > { %s297_s2 = scalar_lea.vmem (!%p1291_p3), [#allocation3], %s718_s20 }
  0x65   : > { %1082 = dma.done.wait (%p1318_p12), %s294_s27, 64  }
  0x66   : > { %1084 = vsyncadd (%p1318_p12), %s294_s27, 4294967232  ;;  %s302_s16 = sand.u32 1, %s1296_s9   ;;  %s304_s18 = sand.u32 1, %s1111_s22  }
  0x67   : > { %s719_s0 = sshll.u32 %s304_s18, 7  ;;  %s303_s17 = scalar_lea.sflag [#allocation7], %s302_s16 }
  0x68   : > { %s1396_s14 = scalar_lea.vmem [#allocation6], %s719_s0 }
  0x69   : > { %1086 = dma.done.wait (%p1330_p7), %s303_s17, 2080  }
  0x6a   : > { %1088 = vsyncadd (%p1330_p7), %s303_s17, 4294965216  ;;  %s1402_s15 = sshll.u32 %s304_s18, 1  ;;  %s349_s24 = sand.u32 1, %s1099_s19  }
  0x6b   : > { %s721_s13 = sshll.u32 %s349_s24, 4  ;;  %s315_s12 = scalar_lea.vmem [#allocation8], %s1402_s15 }
  0x6c   : > { %s1408_s9 = scalar_lea.vmem [#allocation9], %s721_s13  ;;  %s1565_s8 = sld [smem:[#allocation15_spill]] }
  0x72   : > { %p722_p4 = scmp.ne.s32.totalorder %s1565_s8, 0 }
  0x73   : > { %s1566_s5 = sld [smem:[#allocation24_spill]] (!%p722_p4) }
  0x74   : > { %365 = sbr.rel (%p722_p4) target bundleno = 433 (0x1b1), region = 56  ;;  %s1567_s10 = sld [smem:[#allocation25_spill]] (!%p722_p4) }
  0x79   : > { %v366_v0 = vld [vmem:[%s297_s2] sm:$0xf]  ;;  %v723_v10 = vld [vmem:[%s1566_s5] ss:$0 sm:$0xff] }
  0x7a   : > { %v367_v1 = vunpack.c.l.bf16 %v366_v0  ;;  %v724_v12 = vld [vmem:[%s1567_s10] ss:$0 sm:$0xff] }
  0x7c   : > { %368 = vadd.xlane.f32.xlu0 %v367_v1 }
 0x105   : > { %v369_v2 = vpop.xlane.xlu0 %368 }
 0x106   : > { %v371_v3 = vmul.f32 0.0078125, %v369_v2 }
 0x108   : > { %v372_v4 = vsub.f32 %v367_v1, %v371_v3 }
 0x10a   : > { %v373_v5 = vmul.f32 %v372_v4, %v372_v4 }
 0x10c   : > { %374 = vadd.xlane.f32.xlu0 %v373_v5 }
 0x195   : > { %v375_v6 = vpop.xlane.xlu0 %374 }
 0x196   : > { %v376_v7 = vmul.f32 0.0078125, %v375_v6 }
 0x198   : > { %v377_v8 = vadd.f32 1e-05, %v376_v7 }
 0x19a   : > { %889 = vrsqrt.f32 %v377_v8 }
 0x1a7   : > { %v890_v9 = vpop.eup %889 }
 0x1a8   : > { %v379_v11 = vmul.f32 %v890_v9, %v372_v4 }
 0x1aa   : > { %v387_v13 = vmul.f32 %v723_v10, %v379_v11 }
 0x1ac   : > { %v395_v14 = vadd.f32 %v724_v12, %v387_v13 }
 0x1ae   : > { %v396_v15 = vpack.c.bf16 %v395_v14, %v395_v14 }
 0x1b0   : > { %397 = vst [vmem:[#allocation2] sm:$0xf] %v396_v15 }
 0x1b1 PF: > { %v891_v16 = vld [vmem:[%s1396_s14 + $0x74] ss:$8 sps:$4 sm:$0xff]   ;;  %v893_v17 = vld [vmem:[%s1396_s14 + $0x70] ss:$8 sps:$4 sm:$0xff]   ;;  %v1155_v18 = vmov 0   ;;  %s1568_s3 = sld [smem:[#allocation15_spill]]  ;;  %v417_v34 = vlaneseq }
 0x1b2   : > { %539 = vmatprep.mubr.bf16.mxu0 %v1155_v18  ;;  %507 = vmatprep.subr.bf16.mxu0 %v891_v16  ;;  %v894_v19 = vld [vmem:[%s1396_s14 + $0x64] ss:$8 sps:$4 sm:$0xff]   ;;  %v896_v20 = vld [vmem:[%s1396_s14 + $0x60] ss:$8 sps:$4 sm:$0xff]   ;;  %v897_v21 = vld [vmem:[%s1396_s14 + $0x54] ss:$8 sps:$4 sm:$0xff]  }
 0x1b3   : > { %508 = vmatpush1.bf16.msra.mxu0 %v893_v17  ;;  %v899_v22 = vld [vmem:[%s1396_s14 + $0x50] ss:$8 sps:$4 sm:$0xff]   ;;  %v900_v23 = vld [vmem:[%s1396_s14 + $0x44] ss:$8 sps:$4 sm:$0xff]   ;;  %v902_v24 = vld [vmem:[%s1396_s14 + $0x40] ss:$8 sps:$4 sm:$0xff]  }
 0x1b4   : > { %509 = vmatprep.subr.bf16.mxu0 %v894_v19  ;;  %v903_v25 = vld [vmem:[%s1396_s14 + $0x34] ss:$8 sps:$4 sm:$0xff]   ;;  %v905_v26 = vld [vmem:[%s1396_s14 + $0x30] ss:$8 sps:$4 sm:$0xff]   ;;  %v906_v27 = vld [vmem:[%s1396_s14 + $0x24] ss:$8 sps:$4 sm:$0xff]  }
 0x1b5   : > { %v908_v28 = vld [vmem:[%s1396_s14 + $0x20] ss:$8 sps:$4 sm:$0xff]   ;;  %v909_v29 = vld [vmem:[%s1396_s14 + $0x14] ss:$8 sps:$4 sm:$0xff]   ;;  %s1569_s20 = sld [smem:[#allocation16_spill]]  ;;  %v418_v35 = vshrl.u32 %v417_v34, 7 }
 0x1b6   : > { %v911_v30 = vld [vmem:[%s1396_s14 + $0x10] ss:$8 sps:$4 sm:$0xff]   ;;  %v912_v31 = vld [vmem:[%s1396_s14 + $0x4] ss:$8 sps:$4 sm:$0xff]   ;;  %v914_v32 = vld [vmem:[%s1396_s14] ss:$8 sps:$4 sm:$0xff]  }
 0x1b7   : > { %510 = vmatpush1.bf16.msra.mxu0 %v896_v20  ;;  %v398_v33 = vld [vmem:[#allocation2] sm:$0xf]  ;;  %v419_v36 = vsub.s32 0, %v418_v35  ;;  %v415_v37 = vld [vmem:[%s315_s12] sm:$0x3]  ;;  %s742_s27 = sshll.u32 %s1568_s3, 1 }
 0x1b8   : > { %511 = vmatprep.subr.bf16.mxu0 %v897_v21  ;;  %v423_v38 = vsub.s32 1, %v418_v35  ;;  %s569_s0 = sshll.u32 %s1408_s9, 4  ;;  %s1570_s15 = sld [smem:[#allocation27_spill]]  ;;  %s1444_s0 = int_to_ptr.vmem [resolvable:$true] %s569_s0 }
 0x1b9   : > { %v420_v39 = vrot.slane %v415_v37, %v419_v36  ;;  %s551_s12 = scalar_lea.sflag [#allocation5], %s349_s24  ;;  %s999_s8 = scalar_lea.vmem %s1444_s0, 256 }
 0x1ba   : > { %v424_v40 = vrot.slane %v415_v37, %v423_v38  ;;  %p1000_p3 = scmp.ne.s32.totalorder %s1444_s0, %s999_s8  ;;  %s1156_s11 = smov [#allocation9]  }
 0x1bb   : > { %512 = vmatpush1.bf16.msra.mxu0 %v899_v22  ;;  %s743_s2 = sshll.u32 %s1569_s20, 3  ;;  %s1003_s21 = sshll.u32 %s1156_s11, 4  ;;  %s1004_s21 = int_to_ptr.vmem [resolvable:$false] %s1003_s21 }
 0x1bc   : > { %513 = vmatprep.subr.bf16.mxu0 %v900_v23  ;;  %s565_s16 = sadd.s32 %s743_s2, %s742_s27  ;;  %p1001_p12 = pnand %p1000_p3, %p1350_p10 }
 0x1bd   : > { %s744_s18 = sshll.u32 %s565_s16, 7  ;;  %s1005_s5 = scalar_lea.vmem %s1004_s21, 512 }
 0x1be   : > { %s1442_s13 = scalar_lea.hbm %s1570_s15, %s744_s18  ;;  %p1002_p7 = pneg %p1001_p12 }
 0x1bf   : > { %514 = vmatpush1.bf16.msra.mxu0 %v902_v24  ;;  %p1006_p0 = scmp.lt.s32.totalorder %s1444_s0, %s1004_s21  ;;  %p1007_p2 = scmp.lt.s32.totalorder %s1005_s5, %s999_s8 }
 0x1c0   : > { %515 = vmatprep.subr.bf16.mxu0 %v903_v25 }
 0x1c1   : > { %p1008_p6 = por %p1007_p2, %p1006_p0 }
 0x1c3   : > { %516 = vmatpush1.bf16.msra.mxu0 %v905_v26  ;;  %p1009_p8 = pnand %p1008_p6, %p1002_p7 }
 0x1c4   : > { %517 = vmatprep.subr.bf16.mxu0 %v906_v27 }
 0x1c7   : > { %518 = vmatpush1.bf16.msra.mxu0 %v908_v28 }
 0x1c8   : > { %519 = vmatprep.subr.bf16.mxu0 %v909_v29 }
 0x1cb   : > { %520 = vmatpush1.bf16.msra.mxu0 %v911_v30 }
 0x1cc   : > { %521 = vmatprep.subr.bf16.mxu0 %v912_v31 }
 0x1cf   : > { %522 = vmatpush1.bf16.msra.mxu0 %v914_v32 }
 0x1d2   : > { %540 = vmatmul.mubr.bf16.vlgmr.msra.gmra.mxu0 %v398_v33 }
 0x292   : > { %v541_v41 = vpop.f32.mrf.mxu0 }
 0x293   : > { %v542_v42 = vadd.f32 %v541_v41, %v420_v39 }
 0x294   : > { %v543_v43 = vpop.f32.mrf.mxu0 }
 0x295   : > { %548 = vst [vmem:[%s1408_s9] sm:$0xff] %v542_v42  ;;  %v544_v44 = vadd.f32 %v543_v43, %v424_v40 }
 0x296   : > { %v545_v45 = vpop.f32.mrf.mxu0 }
 0x297   : > { %549 = vst [vmem:[%s1408_s9 + $0x8] sm:$0xff] %v544_v44 }
 0x298   : > { %v546_v46 = vpop.f32.mrf.mxu0 }
 0x299   : > { %1012 = shalt.err (!%p1009_p8)
}
 0x29a   : > { %s1013_s9 = scalar_lea.hbm %s1442_s13, 256  ;;  %s1017_s28 = scalar_lea.hbm %s1570_s15, 3072 }
 0x29b   : > { %p1014_p9 = scmp.ne.s32.totalorder %s1442_s13, %s1013_s9  ;;  %p1018_p11 = scmp.lt.s32.totalorder %s1442_s13, %s1570_s15 }
 0x29c   : > { %p1019_p5 = scmp.lt.s32.totalorder %s1017_s28, %s1013_s9 }
 0x29d   : > { %p1015_p13 = pnand %p1014_p9, %p1350_p10 }
 0x29e   : > { %p1020_p4 = por %p1019_p5, %p1018_p11 }
 0x29f   : > { %p1016_p1 = pneg %p1015_p13 }
 0x2a1   : > { %p1021_p3 = pnand %p1020_p4, %p1016_p1 }
 0x2a3   : > { %1024 = shalt.err (!%p1021_p3)
}
 0x2a4   : > { %755 = dma.vmem_to_hbm [thread:$0]  (%p1350_p10), %s1444_s0, 256, %s1442_s13, %s551_s12  }
 0x2a5 PF: > { %s1571_s20 = sld [smem:[#allocation13_spill]]  ;;  %p772_p12 = scmp.ge.s32.totalorder %s1147_s6, 2 }
 0x2a6   : > { %p1572_p7 = scmp.ne.s32.totalorder %s1559_s7, 0 }
 0x2a8   : > { %p768_p0 = pnand %p772_p12, %p1572_p7 }
 0x2aa   : > { %p769_p2 = pneg %p768_p0 }
 0x2ab   : > { %s581_s27 = sand.u32 1, %s1571_s20  }
 0x2ac   : > { %s582_s2 = scalar_lea.sflag [#allocation5], %s581_s27 }
 0x2ad   : > { %1090 = dma.done.wait (%p769_p2), %s582_s2, 256  }
 0x2ae   : > { %1092 = vsyncadd (%p769_p2), %s582_s2, 4294967040  ;;  %s24_s6 = sadd.s32 1, %s1147_s6   ;;  %s1574_s1 = sld [smem:[#allocation14_spill]] }
 0x2af   : > { %p1474_p6 = scmp.ge.s32.totalorder %s24_s6, 14   ;;  %s1575_s20 = sld [smem:[#allocation22_spill]] }
 0x2b0   : > { %s1576_s0 = sld [smem:[#allocation20_spill]]  ;;  %s1581_s18 = smov %s1099_s19 }
 0x2b1   : > { %s1577_s7 = sld [smem:[#allocation21_spill]]  ;;  %s1583_s21 = smov %s1111_s22 }
 0x2b2   : > { %s1578_s28 = sld [smem:[#allocation17_spill]]  ;;  %s1584_s22 = smov %s1115_s23 }
 0x2b3   : > { %s1579_s17 = sld [smem:[#allocation18_spill]]  ;;  %s1586_s24 = smov %s1123_s25 }
 0x2b4   : > { %s1580_s30 = sld [smem:[#allocation19_spill]]  ;;  %s1582_s19 = smov %s1574_s1 }
 0x2b5   : > { %s1587_s25 = smov %s1127_s26  ;;  %s1589_s27 = smov %s1139_s29 }
 0x2b6   : > { %s1585_s23 = smov %s1576_s0  ;;  %23 = sbr.rel (!%p1474_p6) target bundleno = 18 (0x12), region = 113 }
 0x2b7   : > { %s1588_s26 = smov %s1577_s7 }
 0x2b9   : > { %s1590_s29 = smov %s1579_s17 }
 0x2bb   :  { %587 = vsyncpa [#allocation4], 1 }
 0x2bc   :  { %589 = vsyncpa [#allocation4 + $0x1], 1 }
 0x2bd   :  { %590 = vsyncpa [#allocation7], 1 }
 0x2be   :  { %592 = vsyncpa [#allocation7 + $0x1], 1 }
 0x2bf   :  { %593 = vsyncpa [#allocation5], 1 }
 0x2c0   :  { %595 = vsyncpa [#allocation5 + $0x1], 1 }

</bundles_post_ra>
